<compile_context>
chip_gen: v6e
topology: v6e:2x2x1
jax: 0.10.0
libtpu: 0.0.40
codegen_flags: <defaults>
</compile_context>

<pallas_src>
import functools
import math

import jax
import jax.numpy as jnp
from jax.experimental import pallas as pl
from jax.experimental.pallas import tpu as pltpu


# ---------------------------------------------------------------------------
# Kernels
# ---------------------------------------------------------------------------

def _phase_kernel(time_ref, freqs_full_ref, phase_ref, out_ref):
    """Lane-dense path: one full-width sin, one unmasked (TB, dim) store.

    time_ref:       (TB, 1)   f32
    freqs_full_ref: (1, dim)  f32  = concat([freqs, freqs])      (grid-invariant)
    phase_ref:      (1, dim)  f32  = concat([0...0, pi/2...pi/2]) (grid-invariant)
    out_ref:        (TB, dim) out_dtype
    """
    t = time_ref[...]
    args = t * freqs_full_ref[...] + phase_ref[...]
    out_ref[...] = jnp.sin(args).astype(out_ref.dtype)


def _two_slab_kernel(time_ref, freqs_ref, out_ref, *, half_dim: int):
    """Exact sin/cos with two slab stores. Used when half_dim % 128 == 0:
    both slabs are lane-aligned so the stores are already unmasked, and we
    avoid the f32 rounding of the +pi/2 phase add."""
    t = time_ref[...]                       # (TB, 1)
    args = t * freqs_ref[...]               # (TB, half)
    out_ref[:, :half_dim] = jnp.sin(args).astype(out_ref.dtype)
    out_ref[:, half_dim:] = jnp.cos(args).astype(out_ref.dtype)


# ---------------------------------------------------------------------------
# Wrapper
# ---------------------------------------------------------------------------

def _round_up(x: int, m: int) -> int:
    return ((x + m - 1) // m) * m


def _vmem_capacity_bytes() -> int:
    try:
        info = pltpu.get_tpu_info()
        return int(getattr(info, "vmem_capacity_bytes", 64 << 20))
    except Exception:
        return 64 << 20  # conservative (v7x per-TC)


def sinusoidal_position_embeddings(
    time: jax.Array,
    dim: int,
    max_period: float = 10000.0,
    *,
    out_dtype=jnp.float32,          # torch emits f32; bf16 is opt-in (v5e store-bound)
    block_rows: int = 4096,
    small_path_bytes: int = 256 * 1024,
) -> jax.Array:
    """JAX/Pallas equivalent of SinusoidalPositionEmbeddings.forward.

    time: shape (B,), any real dtype. Returns (B, dim) in out_dtype (default f32).
    """
    assert dim >= 2 and dim % 2 == 0, "dim must be even and >= 2"
    half_dim = dim // 2
    (b,) = time.shape

    # torch would divide by zero for half_dim == 1; guarded here (documented
    # deviation, only affects dim == 2).
    denom = max(half_dim - 1, 1)
    scale = math.log(float(max_period)) / denom
    freqs = jnp.exp(jnp.arange(half_dim, dtype=jnp.float32) * (-scale))

    time_2d = time.astype(jnp.float32).reshape(b, 1)
    out_itemsize = jnp.dtype(out_dtype).itemsize
    out_bytes = b * dim * out_itemsize

    # Kernel / trace-time constant selection.
    use_phase = (half_dim % 128) != 0
    if use_phase:
        freqs_full = jnp.concatenate([freqs, freqs]).reshape(1, dim)
        phase = jnp.concatenate(
            [jnp.zeros((half_dim,), jnp.float32),
             jnp.full((half_dim,), 0.5 * math.pi, jnp.float32)]
        ).reshape(1, dim)
        const_inputs = (freqs_full, phase)
        kernel = _phase_kernel
    else:
        const_inputs = (freqs.reshape(1, half_dim),)
        kernel = functools.partial(_two_slab_kernel, half_dim=half_dim)
    n_const = len(const_inputs)

    cost = pl.CostEstimate(
        flops=2 * b * dim,
        transcendentals=b * dim,
        bytes_accessed=out_bytes + b * 4 + sum(c.size for c in const_inputs) * 4,
    )

    # ------------------------------------------------------------------
    # Small problems: single whole-array block (grid/pipelining is pure
    # overhead). Gated on bytes so a large B or dim never lands here.
    # ------------------------------------------------------------------
    if b < 16 or out_bytes <= small_path_bytes:
        return pl.pallas_call(
            kernel,
            out_shape=jax.ShapeDtypeStruct((b, dim), out_dtype),
            in_specs=[pl.BlockSpec(memory_space=pltpu.MemorySpace.VMEM)]
            * (1 + n_const),
            out_specs=pl.BlockSpec(memory_space=pltpu.MemorySpace.VMEM),
            cost_estimate=cost,
        )(time_2d, *const_inputs)

    # ------------------------------------------------------------------
    # Grid path: tile over B, double-buffered, axis "parallel" (megacore).
    # ------------------------------------------------------------------
    per_row = 2 * (4 + dim * out_itemsize)  # double-buffered time-in + out bytes
    budget = (32 << 20) if _vmem_capacity_bytes() >= (96 << 20) else (16 << 20)
    tb_cap = max(8, (budget // per_row) // 8 * 8)
    # >= 2 grid steps so v7x's two TensorCores both get work.
    tb = min(block_rows, tb_cap, _round_up(pl.cdiv(b, 2), 8))
    tb = max(8, (tb // 8) * 8)
    grid = (pl.cdiv(b, tb),)

    footprint = per_row * tb + 2 * n_const * dim * 4  # approx pipelined VMEM use
    compiler_kwargs = {}
    if footprint > (24 << 20):
        # Only override the default scoped-VMEM limit when we actually need
        # more (never reserve all of v7x's 64 MiB for a tiny kernel).
        compiler_kwargs["vmem_limit_bytes"] = int(footprint + (8 << 20))

    if use_phase:
        in_specs = [
            pl.BlockSpec((tb, 1), lambda i: (i, 0)),        # time block
            pl.BlockSpec((1, dim), lambda i: (0, 0)),       # resident freqs_full
            pl.BlockSpec((1, dim), lambda i: (0, 0)),       # resident phase
        ]
    else:
        in_specs = [
            pl.BlockSpec((tb, 1), lambda i: (i, 0)),        # time block
            pl.BlockSpec((1, half_dim), lambda i: (0, 0)),  # resident freqs
        ]

    return pl.pallas_call(
        kernel,
        out_shape=jax.ShapeDtypeStruct((b, dim), out_dtype),
        grid_spec=pltpu.PrefetchScalarGridSpec(
            num_scalar_prefetch=0,
            grid=grid,
            in_specs=in_specs,
            out_specs=pl.BlockSpec((tb, dim), lambda i: (i, 0)),
        ),
        compiler_params=pltpu.CompilerParams(
            dimension_semantics=("parallel",),
            **compiler_kwargs,
        ),
        cost_estimate=cost,
    )(time_2d, *const_inputs)


# ---------------------------------------------------------------------------
# Pure-JAX reference (mirrors the torch module exactly, incl. f32 output).
# ---------------------------------------------------------------------------

def _reference(time, dim, max_period=10000.0):
    half_dim = dim // 2
    denom = max(half_dim - 1, 1)
    scale = math.log(max_period) / denom
    freqs = jnp.exp(jnp.arange(half_dim, dtype=jnp.float32) * -scale)
    args = time.astype(jnp.float32)[:, None] * freqs[None, :]
    return jnp.concatenate([jnp.sin(args), jnp.cos(args)], axis=-1)


if __name__ == "__main__":
    key = jax.random.PRNGKey(0)
    k1, k2, k3 = jax.random.split(key, 3)

    # 1) Typical diffusion-timestep shape: B=8, dim=32
    #    (single-block path, phase-trick kernel since half_dim=16 % 128 != 0).
    t1 = jax.random.uniform(k1, (8,), jnp.float32, minval=0.0, maxval=100.0)
    o1 = jax.block_until_ready(sinusoidal_position_embeddings(t1, 32))
    r1 = _reference(t1, 32)
    assert o1.shape == (8, 32) and o1.dtype == jnp.float32
    # cos computed as sin(x + pi/2): the f32 rounding of the add contributes a
    # small argument error, so compare with a slightly loosened tolerance.
    assert jnp.allclose(o1, r1, atol=2e-4, rtol=0), "mismatch (small / phase path)"

    # 2) Grid path with a ragged last block: B=70, dim=32, forced 16-row blocks.
    t2 = jax.random.uniform(k2, (70,), jnp.float32, minval=0.0, maxval=100.0)
    o2 = jax.block_until_ready(
        sinusoidal_position_embeddings(t2, 32, block_rows=16, small_path_bytes=0)
    )
    r2 = _reference(t2, 32)
    assert o2.shape == (70, 32) and o2.dtype == jnp.float32
    assert jnp.allclose(o2, r2, atol=2e-4, rtol=0), "mismatch (grid / ragged path)"

    # 3) Lane-aligned halves (half_dim = 128): exact two-slab kernel.
    t3 = jax.random.uniform(k3, (16,), jnp.float32, minval=0.0, maxval=100.0)
    o3 = jax.block_until_ready(sinusoidal_position_embeddings(t3, 256))
    r3 = _reference(t3, 256)
    assert o3.shape == (16, 256) and o3.dtype == jnp.float32
    assert jnp.allclose(o3, r3, atol=1e-4, rtol=0), "mismatch (aligned slab path)"

    print("KERNEL_OK")
</pallas_src>

<mosaic_0001>
module attributes {stable_mosaic.version = 11 : i64} {
  func.func @_phase_kernel(%arg0: memref<8x1xf32, #tpu.memory_space<vmem>>, %arg1: memref<1x32xf32, #tpu.memory_space<vmem>>, %arg2: memref<1x32xf32, #tpu.memory_space<vmem>>, %arg3: memref<8x32xf32, #tpu.memory_space<vmem>>) attributes {dimension_semantics = [], scalar_prefetch = 0 : i64, scratch_operands = 0 : i64, tpu.core_type = #tpu.core_type<tc>} {
    %c0 = arith.constant 0 : index
    %c0_0 = arith.constant 0 : index
    %0 = vector.load %arg0[%c0, %c0_0] : memref<8x1xf32, #tpu.memory_space<vmem>>, vector<8x1xf32>
    %c0_1 = arith.constant 0 : index
    %c0_2 = arith.constant 0 : index
    %1 = vector.load %arg1[%c0_1, %c0_2] : memref<1x32xf32, #tpu.memory_space<vmem>>, vector<1x32xf32>
    %2 = vector.broadcast %0 : vector<8x1xf32> to vector<8x32xf32>
    %3 = vector.broadcast %1 : vector<1x32xf32> to vector<8x32xf32>
    %4 = arith.mulf %2, %3 : vector<8x32xf32>
    %c0_3 = arith.constant 0 : index
    %c0_4 = arith.constant 0 : index
    %5 = vector.load %arg2[%c0_3, %c0_4] : memref<1x32xf32, #tpu.memory_space<vmem>>, vector<1x32xf32>
    %6 = vector.broadcast %5 : vector<1x32xf32> to vector<8x32xf32>
    %7 = arith.addf %4, %6 : vector<8x32xf32>
    %8 = math.sin %7 : vector<8x32xf32>
    %c0_5 = arith.constant 0 : index
    %c0_6 = arith.constant 0 : index
    %9 = vector.load %arg3[%c0_5, %c0_6] : memref<8x32xf32, #tpu.memory_space<vmem>>, vector<8x32xf32>
    tpu.vector_store %arg3[%c0_5, %c0_6], %8 {strides = array<i32>} : memref<8x32xf32, #tpu.memory_space<vmem>>, vector<8x32xf32>,
    return
  }
}

</mosaic_0001>

<bundles_post_ra>
// kernel: tpu_custom_call.1
= control target key start
LH: loop header
LB: loop body
LE: loop exit
PB: predicated region body
PF: predicated region fallthrough
CT: control target
= control target key end

     0   :  { %v202_v1 = vmov 0   ;;  %s263_s0 = inlined_call_operand.vmem [shape: f32[8,1], index: 0, kind: input, shape index: {}]   ;;  %s264_s1 = inlined_call_operand.vmem [shape: f32[1,32], index: 1, kind: input, shape index: {}]   ;;  %s265_s2 = inlined_call_operand.vmem [shape: f32[1,32], index: 2, kind: input, shape index: {}]   ;;  %s266_s3 = inlined_call_operand.hbm [shape: f32[8,32], index: 3, kind: output, shape index: {}]  }
   0x1   :  { %v15_v0 = vld [vmem:[%s263_s0] sm:$0xff]  ;;  %175 = vset.pattern.permute.xlu0 %v202_v1 }
   0x2   :  { %19 = vperm.xlu0 %175, %v15_v0  }
   0x3   :  { %8 = vsyncpa [#allocation3], 0  ;;  %v157_v2 = vld [vmem:[%s264_s1] ss:$0 sm:$0xff]  ;;  %v203_v18 = vmov 2102212464  }
   0x4   :  { %v158_v3 = vld [vmem:[%s265_s2] ss:$0 sm:$0xff]  ;;  %v204_v20 = vmov 920167782   ;;  %v205_v24 = vmov 1326507024  }
   0x5   :  { %v206_v26 = vmov 683565275   ;;  %v207_v28 = vmov 2475754826   ;;  %v208_v31 = vmov 2131351028  }
   0x6   :  { %s209_s0 = smov [#allocation2]   ;;  %vm141_vm12 = vcmask 261120  }
   0x7   :  { %s149_s1 = sshll.u32 %s209_s0, 4  ;;  %s150_s1 = int_to_ptr.vmem [resolvable:$true] %s149_s1 }
   0x8   :  { %s180_s2 = scalar_lea.vmem %s150_s1, 128  ;;  %p185_p1 = scmp.lt.s32.totalorder %s150_s1, %s150_s1 }
   0x9   :  { %p181_p0 = scmp.ne.s32.totalorder %s150_s1, %s180_s2  ;;  %p186_p2 = scmp.lt.s32.totalorder %s180_s2, %s180_s2 }
   0xb   :  { %p187_p3 = por %p186_p2, %p185_p1 }
   0xd   :  { %p188_p4 = pnand %p187_p3, %p181_p0 }
  0x7d   :  { %v20_v4 = vpop.permute.xlu0 %19 }
  0x7e   :  { %v28_v5 = vmul.f32 %v157_v2, %v20_v4 }
  0x80   :  { %v239_v6 = vadd.f32 %v158_v3, %v28_v5 }
  0x82   :  { %v40_v7 = vand.u32 2139095040, %v239_v6  ;;  %v37_v8 = vand.u32 2147483647, %v239_v6  ;;  %vm39_vm7 = vcmp.lt.s32.totalorder %v239_v6, 0  ;;  %vm129_vm13 = vweird.f32 %v239_v6 }
  0x84   :  { %v41_v9 = vshrl.u32 %v40_v7, 23  ;;  %v44_v11 = vand.u32 8388607, %v37_v8  ;;  %vm38_vm8 = vcmp.le.f32.partialorder %v37_v8, 0.7853982 }
  0x86   :  { %v159_v10 = vadd.s32 4294967169, %v41_v9  ;;  %v45_v14 = vor.u32 8388608, %v44_v11 }
  0x88   :  { %v47_v12 = vadd.s32 1, %v159_v10  ;;  %v85_v22 = vshll.u32 %v45_v14, 8 }
  0x8a   :  { %vm48_vm0 = vcmp.gt.s32.totalorder %v47_v12, 0 }
  0x8b   :  { %v49_v13 = vsel %vm48_vm0, %v47_v12, 0 }
  0x8c   :  { %v51_v15 = vand.u32 31, %v49_v13  ;;  %v50_v16 = vshrl.u32 %v49_v13, 5 }
  0x8e   :  { %v52_v17 = vsub.s32 32, %v51_v15  ;;  %v63_v19 = vshll.u32 %v203_v18, %v51_v15  ;;  %v66_v21 = vshll.u32 %v204_v20, %v51_v15  ;;  %v54_v27 = vshll.u32 %v206_v26, %v51_v15 }
  0x8f   :  { %v57_v30 = vshll.u32 %v207_v28, %v51_v15  ;;  %v60_v33 = vshll.u32 %v208_v31, %v51_v15  ;;  %vm72_vm1 = vcmp.lt.s32.totalorder %v50_v16, 4  ;;  %vm69_vm2 = vcmp.lt.s32.totalorder %v50_v16, 1 }
  0x90   :  { %v64_v23 = vshrl.u32 %v204_v20, %v52_v17  ;;  %v67_v25 = vshrl.u32 %v205_v24, %v52_v17  ;;  %v55_v29 = vshrl.u32 %v207_v28, %v52_v17  ;;  %v58_v32 = vshrl.u32 %v208_v31, %v52_v17 }
  0x91   :  { %v61_v34 = vshrl.u32 %v203_v18, %v52_v17  ;;  %v53_v38 = vshrl.u32 %v206_v26, %v52_v17  ;;  %vm70_vm3 = vcmp.lt.s32.totalorder %v50_v16, 2  ;;  %vm71_vm4 = vcmp.lt.s32.totalorder %v50_v16, 3 }
  0x92   :  { %v65_v35 = vor.u32 %v64_v23, %v63_v19  ;;  %v68_v36 = vor.u32 %v67_v25, %v66_v21  ;;  %v56_v37 = vor.u32 %v55_v29, %v54_v27  ;;  %v59_v39 = vor.u32 %v58_v32, %v57_v30 }
  0x93   :  { %v62_v40 = vor.u32 %v61_v34, %v60_v33 }
  0x94   :  { %v78_v41 = vsel %vm72_vm1, %v65_v35, 920167782  ;;  %v82_v42 = vsel %vm72_vm1, %v68_v36, 1326507024  ;;  %v77_v44 = vsel %vm69_vm2, %v56_v37, %v59_v39  ;;  %v73_v47 = vsel %vm69_vm2, %v53_v38, %v56_v37 }
  0x95   :  { %v74_v43 = vsel %vm72_vm1, %v62_v40, 2102212464  ;;  %v79_v45 = vsel %vm71_vm4, %v62_v40, %v78_v41  ;;  %v81_v46 = vsel %vm69_vm2, %v59_v39, %v62_v40  ;;  %v83_v50 = vsel %vm71_vm4, %v65_v35, %v82_v42 }
  0x96   :  { %v75_v48 = vsel %vm71_vm4, %v59_v39, %v74_v43  ;;  %v80_v49 = vsel %vm70_vm3, %v77_v44, %v79_v45  ;;  %v84_v51 = vsel %vm70_vm3, %v81_v46, %v83_v50 }
  0x97   :  { %v245_v52 = vmul.u32.u64.low %v85_v22, %v80_v49  ;;  %v246_v53 = vmul.u32.u64.high %v85_v22, %v80_v49, %v245_v52  ;;  %v248_v54 = vmul.u32.u64.low %v85_v22, %v84_v51  ;;  %v249_v55 = vmul.u32.u64.high %v85_v22, %v84_v51, %v248_v54 }
  0x98   :  { %v76_v56 = vsel %vm70_vm3, %v73_v47, %v75_v48 }
  0x99   :  { %v95_v57 = vadd.s32 1, %v246_v53  ;;  %v92_v58 = vmul.u32 %v85_v22, %v76_v56  ;;  %vm94_vm5 = vc.u32 %v249_v55, %v245_v52  ;;  %v93_v7 = vadd.s32 %v245_v52, %v249_v55 }
  0x9b   :  { %v96_v59 = vsel %vm94_vm5, %v95_v57, %v246_v53 }
  0x9c   :  { %v97_v60 = vadd.s32 %v96_v59, %v92_v58 }
  0x9e   :  { %v98_v61 = vadd.s32 536870912, %v97_v60 }
  0xa0   :  { %v99_v62 = vshrl.u32 %v98_v61, 30 }
  0xa2   :  { %v100_v63 = vshll.u32 %v99_v62, 30  ;;  %v123_v21 = vsub.s32 4, %v99_v62 }
  0xa4   :  { %v101_v0 = vsub.s32 %v97_v60, %v100_v63  ;;  %v124_v24 = vsel %vm39_vm7, %v123_v21, %v99_v62 }
  0xa5   :  { %v126_v25 = vsel %vm38_vm8, 0, %v124_v24 }
  0xa6   :  { %v103_v1 = vsub.s32 0, %v101_v0  ;;  %v130_v26 = vadd.s32 3, %v126_v25 }
  0xa8   :  { %v160_v2 = vmin.u32 %v103_v1, %v101_v0  ;;  %v131_v27 = vand.u32 3, %v130_v26 }
  0xaa   :  { %v105_v3 = vclz %v160_v2  ;;  %vm136_vm9 = vcmp.eq.s32.totalorder %v131_v27, 2  ;;  %vm133_vm10 = vcmp.eq.s32.totalorder %v131_v27, 0  ;;  %vm132_vm11 = vcmp.lt.s32.totalorder %v131_v27, 2 }
  0xac   :  { %v161_v4 = vadd.s32 4294967294, %v105_v3 }
  0xae   :  { %vm162_vm6 = vcmp.lt.s32.totalorder %v161_v4, 0 }
  0xaf   :  { %v108_v5 = vsel %vm162_vm6, 0, %v161_v4 }
  0xb0   :  { %v109_v9 = vsub.s32 32, %v108_v5  ;;  %v113_v10 = vsub.s32 4294967266, %v108_v5  ;;  %v110_v11 = vshll.u32 %v101_v0, %v108_v5 }
  0xb2   :  { %v111_v12 = vshrl.u32 %v93_v7, %v109_v9  ;;  %v114_v13 = vadd.s32 127, %v113_v10 }
  0xb4   :  { %v112_v14 = vor.u32 %v111_v12, %v110_v11  ;;  %v115_v15 = vshll.u32 %v114_v13, 23 }
  0xb6   :  { %v116_v16 = vor.u32 4788187, %v115_v15  ;;  %v119_v18 = vcvt.s32.f32 %v112_v14 }
  0xb8   :  { %v117_v17 = vand.u32 2147483647, %v116_v16 }
  0xba   :  { %v120_v19 = vmul.f32 %v119_v18, %v117_v17 }
  0xbc   :  { %v121_v20 = vxor.u32 2147483648, %v120_v19 }
  0xbe   :  { %v122_v22 = vsel %vm39_vm7, %v121_v20, %v120_v19 }
  0xbf   :  { %v125_v23 = vsel %vm38_vm8, %v239_v6, %v122_v22 }
  0xc0   :  { %176 = vcosq.f32 %v125_v23 }
  0xc1   :  { %178 = vsinq.f32 %v125_v23 }
  0xcd   :  { %v177_v28 = vpop.eup %176 }
  0xce   :  { %v179_v29 = vpop.eup %178  ;;  %v137_v30 = vxor.u32 2147483648, %v177_v28 }
  0xcf   :  { %v134_v31 = vxor.u32 2147483648, %v179_v29 }
  0xd0   :  { %v138_v32 = vsel %vm136_vm9, %v137_v30, %v179_v29 }
  0xd1   :  { %v135_v8 = vsel %vm133_vm10, %v177_v28, %v134_v31 }
  0xd2   :  { %v139_v33 = vsel %vm132_vm11, %v135_v8, %v138_v32 }
  0xd3   :  { %v140_v34 = vsel %vm129_vm13, nan, %v139_v33 }
  0xd4   :  { %142 = vst.msk [vmem:[#allocation2] sm:$0xff] %vm141_vm12, %v140_v34 }
  0xd5   :  { %191 = shalt.err (!%p188_p4)
}
  0xd6   :  { %152 = dma.vmem_to_hbm [thread:$0]  %s150_s1, 128, %s266_s3, [#allocation3]  }
  0xd7   :  { %200 = dma.done.wait [#allocation3], 128  }
  0xd8   :  { %201 = vsyncadd [#allocation3], 4294967168 }
  0xd9   :  { %156 = vsyncpa [#allocation3], 1 }

</bundles_post_ra>
